<compile_context>
chip_gen: v7x
topology: tpu7x:2x2x1
jax: 0.10.0
libtpu: 0.0.40
codegen_flags: <defaults>
</compile_context>

<pallas_src>
import jax
import jax.numpy as jnp
from jax.experimental import pallas as pl
from jax.experimental.pallas import tpu as pltpu

LN_EPS = 1e-5


def _layernorm_affine(z, gamma, beta, out_dtype):
    mean = jnp.mean(z, axis=-1, keepdims=True)
    ctr = z - mean
    var = jnp.mean(ctr * ctr, axis=-1, keepdims=True)
    zn = ctr * jax.lax.rsqrt(var + LN_EPS)
    return (zn * gamma + beta).astype(out_dtype)


def ffn_resident_kernel(x_ref, w1_ref, b1_ref, w2_ref, b2_ref, gamma_ref,
                        beta_ref, o_ref):
    """Weights fully VMEM-resident; grid = (row_tiles,)."""
    x_bf = x_ref[...].astype(jnp.bfloat16)
    h = jnp.dot(x_bf, w1_ref[...], preferred_element_type=jnp.float32)
    h = h + b1_ref[...]
    act = (h * jax.nn.sigmoid(h)).astype(jnp.bfloat16)        # SiLU, f32 math
    # (dropout -> identity in eval mode)
    y = jnp.dot(act, w2_ref[...], preferred_element_type=jnp.float32)
    y = y + b2_ref[...]
    # (dropout -> identity in eval mode)
    z = y + x_ref[...].astype(jnp.float32)                     # residual, f32
    o_ref[...] = _layernorm_affine(z, gamma_ref[...], beta_ref[...], o_ref.dtype)


def ffn_tiled_kernel(x_ref, w1_ref, b1_ref, w2_ref, b2_ref, gamma_ref,
                     beta_ref, o_ref, acc_ref, xbf_ref):
    """Hidden-dim tiled fallback; grid = (row_tiles [parallel], H tiles [arbitrary])."""
    k = pl.program_id(1)

    @pl.when(k == 0)
    def _init():
        acc_ref[...] = jnp.zeros_like(acc_ref)
        xbf_ref[...] = x_ref[...].astype(jnp.bfloat16)   # hoisted cast (once / row tile)

    h = jnp.dot(xbf_ref[...], w1_ref[...], preferred_element_type=jnp.float32)
    h = h + b1_ref[...]
    act = (h * jax.nn.sigmoid(h)).astype(jnp.bfloat16)         # SiLU, f32 math
    # (dropout -> identity)
    acc_ref[...] += jnp.dot(act, w2_ref[...], preferred_element_type=jnp.float32)

    @pl.when(k == pl.num_programs(1) - 1)
    def _finalize():
        y = acc_ref[...] + b2_ref[...]
        # (dropout -> identity)
        z = y + x_ref[...].astype(jnp.float32)
        o_ref[...] = _layernorm_affine(z, gamma_ref[...], beta_ref[...],
                                       o_ref.dtype)


def _round_up(a, b):
    return (a + b - 1) // b * b


def _vmem_budget_bytes():
    """Generation-aware scoped-VMEM budget: capacity minus headroom."""
    cap = 64 << 20                                   # conservative default (v7x per-TC)
    try:
        cap = int(pltpu.get_tpu_info().vmem_capacity_bytes)
    except Exception:
        pass
    return max(32 << 20, cap - (16 << 20))


def _choose_tm(n_rows, tm_hint):
    """Row tile: 8-aligned, low padding waste, >=2 tiles when possible (v7x megacore)."""
    n8 = _round_up(n_rows, 8)
    if n8 <= 8:
        return n8
    n_tiles = max(2, -(-n8 // tm_hint))
    return _round_up(-(-n8 // n_tiles), 8)


def _choose_th(H, th_hint):
    """Hidden reduction tile: must divide H, prefer a multiple of 128."""
    th_hint = max(1, min(th_hint, H))
    best = None
    for cand in range(th_hint, 0, -1):
        if H % cand == 0:
            if cand % 128 == 0:
                return cand
            if best is None:
                best = cand
    return best if best is not None else H


def feed_forward_module(x, w1, b1, w2, b2, gamma, beta, *, tm=None, th=512):
    """x: (B, S, D). Returns LayerNorm(Linear2(SiLU(Linear1(x))) + x)."""
    B, S, D = x.shape
    H = w1.shape[1]
    N = B * S

    budget = _vmem_budget_bytes()
    xb = jnp.dtype(x.dtype).itemsize

    # bf16 weights + f32 biases/affine, allowing for double-buffered allocation.
    w_resident = 2 * 2 * (D * H + H * D) * 2 + 2 * (H + 3 * D) * 4
    use_resident = w_resident <= budget // 2

    tm_hint = tm if tm is not None else (512 if use_resident else 1024)
    tm = _choose_tm(N, tm_hint)

    if use_resident:
        def est_fn(t):
            return (w_resident
                    + 2 * 2 * t * D * xb          # x-in + out tiles (2-buffered)
                    + t * H * 4 + t * H * 2       # h (f32) + act (bf16) working set
                    + 2 * t * D * 4)              # residual / LayerNorm f32 temps
    else:
        th = _choose_th(H, th)

        def est_fn(t):
            return (2 * 2 * (D * th + th * D) * 2   # W1/W2 tiles (2-buffered, bf16)
                    + 2 * (th + 3 * D) * 4          # bias / affine tiles
                    + 2 * 2 * t * D * xb            # x-in + out tiles
                    + t * D * 4 + t * D * 2         # acc scratch + hoisted x_bf scratch
                    + t * th * 4 + t * th * 2)      # h (f32) + act (bf16) working set

    est = est_fn(tm)
    while est > budget and tm > 8:
        tm = max(8, _round_up(tm // 2, 8))
        est = est_fn(tm)

    n_pad = _round_up(N, tm)
    x2 = x.reshape(N, D)                     # native dtype, no f32 upcast
    if n_pad != N:
        x2 = jnp.pad(x2, ((0, n_pad - N), (0, 0)))

    w1_bf = w1.astype(jnp.bfloat16)
    w2_bf = w2.astype(jnp.bfloat16)
    b1_2 = b1.reshape(1, H).astype(jnp.float32)
    b2_2 = b2.reshape(1, D).astype(jnp.float32)
    g_2 = gamma.reshape(1, D).astype(jnp.float32)
    be_2 = beta.reshape(1, D).astype(jnp.float32)

    vmem_limit = int(min(budget, max(int(1.5 * est), 32 << 20)))

    if use_resident:
        call = pl.pallas_call(
            ffn_resident_kernel,
            out_shape=jax.ShapeDtypeStruct((n_pad, D), x.dtype),
            grid_spec=pltpu.PrefetchScalarGridSpec(
                num_scalar_prefetch=0,
                grid=(n_pad // tm,),
                in_specs=[
                    pl.BlockSpec((tm, D), lambda i: (i, 0)),   # x rows
                    pl.BlockSpec((D, H), lambda i: (0, 0)),    # W1 (resident)
                    pl.BlockSpec((1, H), lambda i: (0, 0)),    # b1 (resident)
                    pl.BlockSpec((H, D), lambda i: (0, 0)),    # W2 (resident)
                    pl.BlockSpec((1, D), lambda i: (0, 0)),    # b2
                    pl.BlockSpec((1, D), lambda i: (0, 0)),    # gamma
                    pl.BlockSpec((1, D), lambda i: (0, 0)),    # beta
                ],
                out_specs=pl.BlockSpec((tm, D), lambda i: (i, 0)),
            ),
            compiler_params=pltpu.CompilerParams(
                dimension_semantics=("parallel",),
                vmem_limit_bytes=vmem_limit,
            ),
        )
    else:
        call = pl.pallas_call(
            ffn_tiled_kernel,
            out_shape=jax.ShapeDtypeStruct((n_pad, D), x.dtype),
            grid_spec=pltpu.PrefetchScalarGridSpec(
                num_scalar_prefetch=0,
                grid=(n_pad // tm, H // th),
                in_specs=[
                    pl.BlockSpec((tm, D), lambda i, k: (i, 0)),   # x rows
                    pl.BlockSpec((D, th), lambda i, k: (0, k)),   # W1 hidden tile
                    pl.BlockSpec((1, th), lambda i, k: (0, k)),   # b1 hidden tile
                    pl.BlockSpec((th, D), lambda i, k: (k, 0)),   # W2 hidden tile
                    pl.BlockSpec((1, D), lambda i, k: (0, 0)),    # b2
                    pl.BlockSpec((1, D), lambda i, k: (0, 0)),    # gamma
                    pl.BlockSpec((1, D), lambda i, k: (0, 0)),    # beta
                ],
                out_specs=pl.BlockSpec((tm, D), lambda i, k: (i, 0)),
                scratch_shapes=[
                    pltpu.VMEM((tm, D), jnp.float32),    # linear2 f32 accumulator
                    pltpu.VMEM((tm, D), jnp.bfloat16),   # hoisted x -> bf16 cast
                ],
            ),
            compiler_params=pltpu.CompilerParams(
                dimension_semantics=("parallel", "arbitrary"),
                vmem_limit_bytes=vmem_limit,
            ),
        )

    out = call(x2, w1_bf, b1_2, w2_bf, b2_2, g_2, be_2)
    if n_pad != N:
        out = out[:N]
    return out.reshape(B, S, D)


def reference(x, w1, b1, w2, b2, gamma, beta):
    h = x @ w1 + b1
    h = h * jax.nn.sigmoid(h)
    y = h @ w2 + b2
    z = y + x
    mean = jnp.mean(z, axis=-1, keepdims=True)
    var = jnp.mean((z - mean) ** 2, axis=-1, keepdims=True)
    zn = (z - mean) / jnp.sqrt(var + LN_EPS)
    return zn * gamma + beta


if __name__ == "__main__":
    # Small shapes consistent with the module: dim=32, expansion_factor=4.
    B, S, D = 2, 8, 32
    EXP = 4
    H = D * EXP

    key = jax.random.PRNGKey(0)
    kx, k1, k2, k3, k4 = jax.random.split(key, 5)

    x = jax.random.normal(kx, (B, S, D), dtype=jnp.float32)

    # Deterministic parameter init (matching nn.Linear's uniform scheme).
    bound1 = 1.0 / (D ** 0.5)
    w1 = jax.random.uniform(k1, (D, H), jnp.float32, -bound1, bound1)
    b1 = jax.random.uniform(k2, (H,), jnp.float32, -bound1, bound1)
    bound2 = 1.0 / (H ** 0.5)
    w2 = jax.random.uniform(k3, (H, D), jnp.float32, -bound2, bound2)
    b2 = jax.random.uniform(k4, (D,), jnp.float32, -bound2, bound2)
    gamma = jnp.ones((D,), jnp.float32)
    beta = jnp.zeros((D,), jnp.float32)

    out = feed_forward_module(x, w1, b1, w2, b2, gamma, beta)
    out = jax.block_until_ready(out)

    ref = reference(x, w1, b1, w2, b2, gamma, beta)
    assert out.shape == (B, S, D)
    # bf16 MXU inputs (f32 accumulation) => slightly looser tolerance vs f32 ref.
    max_err = float(jnp.max(jnp.abs(out - ref)))
    assert jnp.allclose(out, ref, atol=3e-2, rtol=3e-2), max_err

    print("KERNEL_OK")
</pallas_src>

<mosaic_0001>
module attributes {stable_mosaic.version = 11 : i64} {
  func.func @ffn_resident_kernel(%arg0: i32, %arg1: memref<8x32xf32, #tpu.memory_space<vmem>>, %arg2: memref<32x128xbf16, #tpu.memory_space<vmem>>, %arg3: memref<1x128xf32, #tpu.memory_space<vmem>>, %arg4: memref<128x32xbf16, #tpu.memory_space<vmem>>, %arg5: memref<1x32xf32, #tpu.memory_space<vmem>>, %arg6: memref<1x32xf32, #tpu.memory_space<vmem>>, %arg7: memref<1x32xf32, #tpu.memory_space<vmem>>, %arg8: memref<8x32xf32, #tpu.memory_space<vmem>>) attributes {dimension_semantics = [#tpu.dimension_semantics<parallel>], iteration_bounds = array<i64: 2>, scalar_prefetch = 0 : i64, scratch_operands = 0 : i64, tpu.core_type = #tpu.core_type<tc>, window_params = [{transform_indices = @transform_0, window_bounds = array<i64: 8, 32>}, {pipeline_mode = #tpu.pipeline_mode<synchronous>, transform_indices = @transform_1, window_bounds = array<i64: 32, 128>}, {pipeline_mode = #tpu.pipeline_mode<synchronous>, transform_indices = @transform_2, window_bounds = array<i64: 1, 128>}, {pipeline_mode = #tpu.pipeline_mode<synchronous>, transform_indices = @transform_3, window_bounds = array<i64: 128, 32>}, {pipeline_mode = #tpu.pipeline_mode<synchronous>, transform_indices = @transform_4, window_bounds = array<i64: 1, 32>}, {pipeline_mode = #tpu.pipeline_mode<synchronous>, transform_indices = @transform_5, window_bounds = array<i64: 1, 32>}, {pipeline_mode = #tpu.pipeline_mode<synchronous>, transform_indices = @transform_6, window_bounds = array<i64: 1, 32>}, {transform_indices = @transform_7, window_bounds = array<i64: 8, 32>}]} {
    %c0 = arith.constant 0 : index
    %c0_0 = arith.constant 0 : index
    %0 = vector.load %arg1[%c0, %c0_0] : memref<8x32xf32, #tpu.memory_space<vmem>>, vector<8x32xf32>
    %1 = arith.truncf %0 : vector<8x32xf32> to vector<8x32xbf16>
    %c0_1 = arith.constant 0 : index
    %c0_2 = arith.constant 0 : index
    %2 = vector.load %arg2[%c0_1, %c0_2] : memref<32x128xbf16, #tpu.memory_space<vmem>>, vector<32x128xbf16>
    %cst = arith.constant dense<0.000000e+00> : vector<8x128xf32>
    %3 = tpu.matmul %1, %2, %cst {dimension_numbers = #tpu.dot_dimension_numbers<[1], [0], [0], [1], [0, 0, 1, 1], [], []>} : vector<8x32xbf16>, vector<32x128xbf16>, vector<8x128xf32> -> vector<8x128xf32>
    %c0_3 = arith.constant 0 : index
    %c0_4 = arith.constant 0 : index
    %4 = vector.load %arg3[%c0_3, %c0_4] : memref<1x128xf32, #tpu.memory_space<vmem>>, vector<1x128xf32>
    %5 = vector.broadcast %4 : vector<1x128xf32> to vector<8x128xf32>
    %6 = arith.addf %3, %5 : vector<8x128xf32>
    %7 = arith.negf %6 : vector<8x128xf32>
    %8 = math.exp %7 : vector<8x128xf32>
    %cst_5 = arith.constant 1.000000e+00 : f32
    %9 = vector.broadcast %cst_5 : f32 to vector<8x128xf32>
    %10 = arith.addf %9, %8 : vector<8x128xf32>
    %11 = arith.divf %9, %10 : vector<8x128xf32>
    %12 = arith.mulf %6, %11 : vector<8x128xf32>
    %13 = arith.truncf %12 : vector<8x128xf32> to vector<8x128xbf16>
    %c0_6 = arith.constant 0 : index
    %c0_7 = arith.constant 0 : index
    %14 = vector.load %arg4[%c0_6, %c0_7] : memref<128x32xbf16, #tpu.memory_space<vmem>>, vector<128x32xbf16>
    %cst_8 = arith.constant dense<0.000000e+00> : vector<8x32xf32>
    %15 = tpu.matmul %13, %14, %cst_8 {dimension_numbers = #tpu.dot_dimension_numbers<[1], [0], [0], [1], [0, 0, 1, 1], [], []>} : vector<8x128xbf16>, vector<128x32xbf16>, vector<8x32xf32> -> vector<8x32xf32>
    %c0_9 = arith.constant 0 : index
    %c0_10 = arith.constant 0 : index
    %16 = vector.load %arg5[%c0_9, %c0_10] : memref<1x32xf32, #tpu.memory_space<vmem>>, vector<1x32xf32>
    %17 = vector.broadcast %16 : vector<1x32xf32> to vector<8x32xf32>
    %18 = arith.addf %15, %17 : vector<8x32xf32>
    %c0_11 = arith.constant 0 : index
    %c0_12 = arith.constant 0 : index
    %19 = vector.load %arg1[%c0_11, %c0_12] : memref<8x32xf32, #tpu.memory_space<vmem>>, vector<8x32xf32>
    %20 = arith.addf %18, %19 : vector<8x32xf32>
    %c0_13 = arith.constant 0 : index
    %c0_14 = arith.constant 0 : index
    %21 = vector.load %arg6[%c0_13, %c0_14] : memref<1x32xf32, #tpu.memory_space<vmem>>, vector<1x32xf32>
    %c0_15 = arith.constant 0 : index
    %c0_16 = arith.constant 0 : index
    %22 = vector.load %arg7[%c0_15, %c0_16] : memref<1x32xf32, #tpu.memory_space<vmem>>, vector<1x32xf32>
    %cst_17 = arith.constant dense<0.000000e+00> : vector<8xf32>
    %23 = vector.multi_reduction <add>, %20, %cst_17 [1] : vector<8x32xf32> to vector<8xf32>
    %24 = vector.shape_cast %23 : vector<8xf32> to vector<8x1xf32>
    %cst_18 = arith.constant 3.200000e+01 : f32
    %25 = vector.broadcast %cst_18 : f32 to vector<8x1xf32>
    %26 = arith.divf %24, %25 : vector<8x1xf32>
    %27 = vector.broadcast %26 : vector<8x1xf32> to vector<8x32xf32>
    %28 = arith.subf %20, %27 : vector<8x32xf32>
    %29 = arith.mulf %28, %28 : vector<8x32xf32>
    %cst_19 = arith.constant dense<0.000000e+00> : vector<8xf32>
    %30 = vector.multi_reduction <add>, %29, %cst_19 [1] : vector<8x32xf32> to vector<8xf32>
    %31 = vector.shape_cast %30 : vector<8xf32> to vector<8x1xf32>
    %cst_20 = arith.constant 3.200000e+01 : f32
    %32 = vector.broadcast %cst_20 : f32 to vector<8x1xf32>
    %33 = arith.divf %31, %32 : vector<8x1xf32>
    %cst_21 = arith.constant 9.99999974E-6 : f32
    %34 = vector.broadcast %cst_21 : f32 to vector<8x1xf32>
    %35 = arith.addf %33, %34 : vector<8x1xf32>
    %36 = math.rsqrt %35 : vector<8x1xf32>
    %37 = vector.broadcast %36 : vector<8x1xf32> to vector<8x32xf32>
    %38 = arith.mulf %28, %37 : vector<8x32xf32>
    %39 = vector.broadcast %21 : vector<1x32xf32> to vector<8x32xf32>
    %40 = arith.mulf %38, %39 : vector<8x32xf32>
    %41 = vector.broadcast %22 : vector<1x32xf32> to vector<8x32xf32>
    %42 = arith.addf %40, %41 : vector<8x32xf32>
    %c0_22 = arith.constant 0 : index
    %c0_23 = arith.constant 0 : index
    %43 = vector.load %arg8[%c0_22, %c0_23] : memref<8x32xf32, #tpu.memory_space<vmem>>, vector<8x32xf32>
    tpu.vector_store %arg8[%c0_22, %c0_23], %42 {strides = array<i32>} : memref<8x32xf32, #tpu.memory_space<vmem>>, vector<8x32xf32>,
    return
  }
  func.func @transform_0(%arg0: i32) -> (i32, i32) {
    %c0_i32 = arith.constant 0 : i32
    %c0_i32_0 = arith.constant 0 : i32
    return %arg0, %c0_i32 : i32, i32
  }
  func.func @transform_1(%arg0: i32) -> (i32, i32) {
    %c0_i32 = arith.constant 0 : i32
    %c0_i32_0 = arith.constant 0 : i32
    %c0_i32_1 = arith.constant 0 : i32
    return %c0_i32, %c0_i32_0 : i32, i32
  }
  func.func @transform_2(%arg0: i32) -> (i32, i32) {
    %c0_i32 = arith.constant 0 : i32
    %c0_i32_0 = arith.constant 0 : i32
    %c0_i32_1 = arith.constant 0 : i32
    return %c0_i32, %c0_i32_0 : i32, i32
  }
  func.func @transform_3(%arg0: i32) -> (i32, i32) {
    %c0_i32 = arith.constant 0 : i32
    %c0_i32_0 = arith.constant 0 : i32
    %c0_i32_1 = arith.constant 0 : i32
    return %c0_i32, %c0_i32_0 : i32, i32
  }
  func.func @transform_4(%arg0: i32) -> (i32, i32) {
    %c0_i32 = arith.constant 0 : i32
    %c0_i32_0 = arith.constant 0 : i32
    %c0_i32_1 = arith.constant 0 : i32
    return %c0_i32, %c0_i32_0 : i32, i32
  }
  func.func @transform_5(%arg0: i32) -> (i32, i32) {
    %c0_i32 = arith.constant 0 : i32
    %c0_i32_0 = arith.constant 0 : i32
    %c0_i32_1 = arith.constant 0 : i32
    return %c0_i32, %c0_i32_0 : i32, i32
  }
  func.func @transform_6(%arg0: i32) -> (i32, i32) {
    %c0_i32 = arith.constant 0 : i32
    %c0_i32_0 = arith.constant 0 : i32
    %c0_i32_1 = arith.constant 0 : i32
    return %c0_i32, %c0_i32_0 : i32, i32
  }
  func.func @transform_7(%arg0: i32) -> (i32, i32) {
    %c0_i32 = arith.constant 0 : i32
    %c0_i32_0 = arith.constant 0 : i32
    return %arg0, %c0_i32 : i32, i32
  }
}

</mosaic_0001>

<bundles_post_ra>
// kernel: tpu_custom_call.1
= control target key start
LH: loop header
LB: loop body
LE: loop exit
PB: predicated region body
PF: predicated region fallthrough
CT: control target
= control target key end

     0   :  { %12 = vsyncpa [#allocation3], 0  ;;  %s944_s0 = inlined_call_operand.vmem [shape: f32[16,32], index: 0, kind: input, shape index: {}]   ;;  %s945_s1 = inlined_call_operand.vmem [shape: bf16[32,128], index: 1, kind: input, shape index: {}]   ;;  %s946_s2 = inlined_call_operand.vmem [shape: f32[1,128], index: 2, kind: input, shape index: {}]   ;;  %s947_s3 = inlined_call_operand.vmem [shape: bf16[128,32], index: 3, kind: input, shape index: {}]   ;;  %s948_s4 = inlined_call_operand.vmem [shape: f32[1,32], index: 4, kind: input, shape index: {}]   ;;  %s949_s5 = inlined_call_operand.vmem [shape: f32[1,32], index: 5, kind: input, shape index: {}]   ;;  %s950_s6 = inlined_call_operand.vmem [shape: f32[1,32], index: 6, kind: input, shape index: {}]   ;;  %s951_s7 = inlined_call_operand.hbm [shape: f32[16,32], index: 7, kind: output, shape index: {}]  }
   0x1   :  { %14 = vsyncpa [#allocation3 + $0x1], 0  ;;  %s798_s24 = smov 0   ;;  %s800_s25 = smov 0  }
   0x2   :  { %s802_s26 = smov 0   ;;  %s804_s27 = smov 0  }
   0x3 LB: > { %s819_s28 = sadd.s32 4294967295, %s753_s27   ;;  %s568_s29 = sadd.s32 4294967294, %s753_s27   ;;  %s753_s27 = sphi %s804_s27, %s957_s27   ;;  %s749_s26 = sphi %s802_s26, %s956_s26   ;;  %s745_s25 = sphi %s800_s25, %s955_s25   ;;  %s741_s24 = sphi %s798_s24, %s954_s24  }
   0x4   : > { %s823_s30 = sadd.s32 1, %s753_s27   ;;  %s179_s8 = sadd.s32 1, %s749_s26 }
   0x5   : > { %s176_s9 = ssub.s32 %s753_s27, %s823_s30  ;;  %p189_p0 = scmp.ne.s32.totalorder %s749_s26, %s745_s25 }
   0x6   : > { %p177_p1 = scmp.eq.s32.totalorder %s176_s9, 0  ;;  %p190_p2 = scmp.eq.s32.totalorder %s819_s28, 1 }
   0x7   : > { %p195_p3 = scmp.ne.s32.totalorder %s745_s25, %s741_s24  ;;  %p196_p4 = scmp.eq.s32.totalorder %s568_s29, 1 }
   0x8   : > { %s834_s10 = scalar_select %p177_p1, %s749_s26, %s179_s8  }
   0x9   : > { %p836_p5 = por %p190_p2, %p189_p0  ;;  %p840_p6 = por %p196_p4, %p195_p3 }
   0xa   : > { %p571_p7 = scmp.ge.s32.totalorder %s753_s27, 1  ;;  %p239_p8 = scmp.lt.s32.totalorder %s753_s27, 3 }
   0xc   : > { %p240_p9 = pnand %p571_p7, %p239_p8 }
   0xd   : > { %v675_v0 = vld [vmem:[%s945_s1] sm:$0xff] (!%p240_p9)   ;;  %v755_v1 = vmov (!%p240_p9), 0.0   ;;  %v676_v2 = vld [vmem:[%s945_s1 + $0x8] sm:$0xff] (!%p240_p9)   ;;  %vm756_vm0 = vmmov (!%p240_p9), 0   ;;  %p270_p10 = scmp.lt.s32.totalorder (!%p240_p9), %s819_s28, 1  ;;  %vm300_vm1 = vcmask (!%p240_p9), 261120  }
   0xe   : > { %243 = sbr.rel (%p240_p9) target bundleno = 815 (0x32f), region = 48  ;;  %606 = vmatprep.subr.bf16.mxu0 (!%p240_p9), %v755_v1  ;;  %614 = vmatprep.subr.bf16.mxu1 (!%p240_p9), %v755_v1  ;;  %v677_v5 = vld [vmem:[%s947_s3] sm:$0xff] (!%p240_p9)   ;;  %v678_v6 = vld [vmem:[%s947_s3 + $0x8] sm:$0xff] (!%p240_p9)   ;;  %v679_v7 = vld [vmem:[%s947_s3 + $0x10] sm:$0xff] (!%p240_p9)   ;;  %s267_s14 = sand.u32 (!%p240_p9), 1, %s745_s25  }
   0xf   : > { %607 = vmatpush3.bf16.msra.mxu0 (!%p240_p9), %v675_v0  ;;  %610 = vmatprep.mubr.msk.bf16.mxu0 (!%p240_p9), %vm756_vm0, %v755_v1  ;;  %v680_v8 = vld [vmem:[%s947_s3 + $0x18] sm:$0xff] (!%p240_p9)   ;;  %v681_v9 = vld [vmem:[%s947_s3 + $0x20] sm:$0xff] (!%p240_p9)   ;;  %v682_v10 = vld [vmem:[%s947_s3 + $0x28] sm:$0xff] (!%p240_p9)   ;;  %s572_s15 = sshll.u32 (!%p240_p9), %s267_s14, 3  ;;  %s591_s20 = sshll.u32 (!%p240_p9), %s819_s28, 7 }
  0x10   : > { %608 = vmatprep.subr.bf16.mxu0 (!%p240_p9), %v755_v1  ;;  %630 = vmatprep.mubr.msk.bf16.mxu1 (!%p240_p9), %vm756_vm0, %v755_v1  ;;  %v683_v11 = vld [vmem:[%s947_s3 + $0x30] sm:$0xff] (!%p240_p9)   ;;  %v684_v12 = vld [vmem:[%s947_s3 + $0x38] sm:$0xff] (!%p240_p9)   ;;  %v574_v13 = vld [vmem:[%s946_s2] ss:$0 sm:$0xff] (!%p240_p9)  ;;  %s901_s8 = scalar_lea.hbm (!%p240_p9), %s951_s7, %s591_s20  ;;  %s496_s9 = scalar_lea.sflag (!%p240_p9), [#allocation3], %s267_s14 }
  0x11   : > { %615 = vmatpush3.bf16.msra.mxu1 (!%p240_p9), %v677_v5  ;;  %v579_v25 = vld [vmem:[%s948_s4] ss:$0 sm:$0xff] (!%p240_p9) }
  0x12   : > { %616 = vmatprep.subr.bf16.mxu1 (!%p240_p9), %v755_v1  ;;  %v588_v42 = vld [vmem:[%s949_s5] ss:$0 sm:$0xff] (!%p240_p9) }
  0x13   : > { %609 = vmatpush3.bf16.msra.mxu0 (!%p240_p9), %v676_v2  ;;  %v589_v44 = vld [vmem:[%s950_s6] ss:$0 sm:$0xff] (!%p240_p9) }
  0x15   : > { %s271_s17 = scalar_select %p270_p10, %s819_s28, 1  ;;  %617 = vmatpush3.bf16.msra.mxu1 %v678_v6 }
  0x16   : > { %618 = vmatprep.subr.bf16.mxu1 %v755_v1  ;;  %s757_s28 = smov [#allocation2]  }
  0x17   : > { %s573_s18 = sshll.u32 %s271_s17, 3 }
  0x18   : > { %s273_s21 = scalar_lea.vmem %s944_s0, %s573_s18 }
  0x19   : > { %v275_v3 = vld [vmem:[%s273_s21] sm:$0xff]  ;;  %619 = vmatpush3.bf16.msra.mxu1 %v679_v7  ;;  %s269_s21 = scalar_lea.vmem [#allocation2], %s572_s15  ;;  %s695_s15 = sshll.u32 %s757_s28, 4  ;;  %s696_s15 = int_to_ptr.vmem [resolvable:$false] %s695_s15 }
  0x1a   : > { %v276_v4 = vpack.c.bf16 %v275_v3, %v275_v3  ;;  %620 = vmatprep.subr.bf16.mxu1 %v755_v1  ;;  %s509_s22 = sshll.u32 %s269_s21, 4  ;;  %s697_s16 = scalar_lea.vmem %s696_s15, 256  ;;  %s903_s22 = int_to_ptr.vmem [resolvable:$true] %s509_s22 }
  0x1b   : > { %s691_s13 = scalar_lea.vmem %s903_s22, 128  ;;  %p698_p0 = scmp.lt.s32.totalorder %s903_s22, %s696_s15 }
  0x1c   : > { %611 = vmatmul.mubr.msk.bf16.vlgmr.msra.gmra.mrb[0].mxu0 %vm300_vm1, %v276_v4  ;;  %p692_p11 = scmp.ne.s32.totalorder %s903_s22, %s691_s13  ;;  %p699_p1 = scmp.lt.s32.totalorder %s697_s16, %s691_s13 }
  0x1d   : > { %621 = vmatpush3.bf16.msra.mxu1 %v680_v8 }
  0x1e   : > { %622 = vmatprep.subr.bf16.mxu1 %v755_v1  ;;  %p693_p12 = pnand %p692_p11, %p836_p5  ;;  %p700_p2 = por %p699_p1, %p698_p0 }
  0x20   : > { %p694_p13 = pneg %p693_p12 }
  0x21   : > { %623 = vmatpush3.bf16.msra.mxu1 %v681_v9 }
  0x22   : > { %624 = vmatprep.subr.bf16.mxu1 %v755_v1  ;;  %p701_p3 = pnand %p700_p2, %p694_p13 }
  0x25   : > { %625 = vmatpush3.bf16.msra.mxu1 %v682_v10 }
  0x26   : > { %626 = vmatprep.subr.bf16.mxu1 %v755_v1 }
  0x29   : > { %627 = vmatpush3.bf16.msra.mxu1 %v683_v11 }
  0x2a   : > { %628 = vmatprep.subr.bf16.mxu1 %v755_v1 }
  0x2d   : > { %629 = vmatpush3.bf16.msra.mxu1 %v684_v12 }
  0xef   : > { %v338_v14 = vpop.f32.mrb[0].mxu0 }
  0xf0   : > { %v339_v15 = vadd.f32 %v574_v13, %v338_v14  ;;  %v612_v16 = vpop.f32.mrb[1].mxu0 }
  0xf1   : > { %v341_v17 = vpop.f32.mrb[2].mxu0 }
  0xf2   : > { %v578_v18 = vmul.f32 -1.442695, %v339_v15  ;;  %v613_v19 = vpop.f32.mrb[3].mxu0 }
  0xf4   : > { %685 = vpow2.f32 %v578_v18 }
  0xfe   : > { %v686_v20 = vpop.eup %685 }
  0xff   : > { %v347_v21 = vadd.f32 1.0, %v686_v20 }
 0x101   : > { %687 = vrcp.f32 %v347_v21 }
 0x10b   : > { %v688_v22 = vpop.eup %687 }
 0x10c   : > { %v350_v23 = vmul.f32 %v688_v22, %v339_v15 }
 0x10e   : > { %v351_v24 = vpack.c.bf16 %v350_v23, %v350_v23 }
 0x110   : > { %631 = vmatmul.mubr.bf16.vlgmr.msra.gmra.mrb[0].mxu1 %v351_v24 }
 0x1e3   : > { %v457_v26 = vpop.f32.mrb[0].mxu1 }
 0x1e4   : > { %v458_v27 = vadd.f32 %v579_v25, %v457_v26  ;;  %v632_v28 = vpop.f32.mrb[1].mxu1 }
 0x1e5   : > { %v460_v29 = vpop.f32.mrb[2].mxu1 }
 0x1e6   : > { %v633_v30 = vpop.f32.mrb[3].mxu1  ;;  %v463_v31 = vadd.f32 %v458_v27, %v275_v3 }
 0x1e8   : > { %v466_v32 = vsel %vm300_vm1, %v463_v31, 0.0 }
 0x1e9   : > { %467 = vadd.xlane.f32.xlu0 %v466_v32 }
 0x276   : > { %v468_v33 = vpop.xlane.xlu0 %467 }
 0x277   : > { %v470_v34 = vmul.f32 0.03125, %v468_v33 }
 0x279   : > { %v471_v35 = vsub.f32 %v463_v31, %v470_v34 }
 0x27b   : > { %v472_v36 = vmul.f32 %v471_v35, %v471_v35 }
 0x27d   : > { %v473_v37 = vsel %vm300_vm1, %v472_v36, 0.0 }
 0x27e   : > { %474 = vadd.xlane.f32.xlu0 %v473_v37 }
 0x30b   : > { %v475_v38 = vpop.xlane.xlu0 %474 }
 0x30c   : > { %v476_v39 = vmul.f32 0.03125, %v475_v38 }
 0x30e   : > { %v477_v40 = vadd.f32 1e-05, %v476_v39 }
 0x310   : > { %689 = vrsqrt.f32 %v477_v40 }
 0x31a   : > { %v690_v41 = vpop.eup %689 }
 0x31b   : > { %v479_v43 = vmul.f32 %v690_v41, %v471_v35 }
 0x31d   : > { %v486_v45 = vmul.f32 %v588_v42, %v479_v43 }
 0x31f   : > { %v493_v46 = vadd.f32 %v589_v44, %v486_v45 }
 0x321   : > { %494 = vst.msk [vmem:[%s269_s21] sm:$0xff] %vm300_vm1, %v493_v46 }
 0x322   : > { %704 = shalt.err (!%p701_p3)
}
 0x323   : > { %s705_s14 = scalar_lea.hbm %s901_s8, 128  ;;  %s709_s19 = scalar_lea.hbm %s951_s7, 256 }
 0x324   : > { %p706_p4 = scmp.ne.s32.totalorder %s901_s8, %s705_s14  ;;  %p710_p9 = scmp.lt.u32.totalorder %s901_s8, %s951_s7 }
 0x325   : > { %p711_p10 = scmp.lt.u32.totalorder %s709_s19, %s705_s14  ;;  %p713_p12 = scmp.lt.u32.totalorder %s705_s14, %s901_s8 }
 0x326   : > { %p707_p7 = pnand %p706_p4, %p836_p5 }
 0x327   : > { %p712_p11 = por %p711_p10, %p710_p9 }
 0x328   : > { %p708_p8 = pneg %p707_p7 }
 0x329   : > { %p714_p13 = por %p713_p12, %p712_p11 }
 0x32b   : > { %p715_p0 = pnand %p714_p13, %p708_p8 }
 0x32d   : > { %718 = shalt.err (!%p715_p0)
}
 0x32e   : > { %634 = dma.vmem_to_hbm [thread:$0]  (%p836_p5), %s903_s22, 128, %s901_s8, %s496_s9  }
 0x32f PF: > { %p640_p1 = scmp.ge.s32.totalorder %s753_s27, 2  ;;  %s521_s23 = sand.u32 1, %s741_s24  }
 0x330   : > { %s522_s29 = scalar_lea.sflag [#allocation3], %s521_s23 }
 0x331   : > { %p637_p2 = pnand %p640_p1, %p840_p6 }
 0x333   : > { %736 = dma.done.wait (!%p637_p2), %s522_s29, 128  }
 0x334   : > { %738 = vsyncadd (!%p637_p2), %s522_s29, 4294967168  ;;  %p17_p3 = scmp.ge.s32.totalorder %s823_s30, 4   ;;  %s954_s24 = smov %s745_s25 }
 0x335   : > { %s955_s25 = smov %s749_s26  ;;  %s956_s26 = smov %s834_s10 }
 0x336   : > { %s957_s27 = smov %s823_s30  ;;  %19 = sbr.rel (!%p17_p3) target bundleno = 3 (0x3), region = 83 }
 0x33d   :  { %527 = vsyncpa [#allocation3], 1 }
 0x33e   :  { %529 = vsyncpa [#allocation3 + $0x1], 1 }

</bundles_post_ra>
